<compile_context>
chip_gen: v7x
topology: tpu7x:2x2x1
jax: 0.10.0
libtpu: 0.0.40
codegen_flags: <defaults>
</compile_context>

<pallas_src>
import math

import jax
import jax.numpy as jnp
from jax.experimental import pallas as pl
from jax.experimental.pallas import tpu as pltpu


def _round_up(a, b):
    return (a + b - 1) // b * b


def _cdiv(a, b):
    return -(-a // b)


def _min_value(dtype):
    dtype = jnp.dtype(dtype)
    if jnp.issubdtype(dtype, jnp.floating):
        return float("-inf")
    if jnp.issubdtype(dtype, jnp.integer):
        return int(jnp.iinfo(dtype).min)
    raise ValueError(f"unsupported dtype for max pooling: {dtype}")


def _vmem_budget():
    """(per_input_buffer_budget, vmem_limit_bytes), generation-aware."""
    try:
        cap = int(pltpu.get_tpu_info().vmem_capacity_bytes)
    except Exception:
        cap = 64 * 1024 * 1024  # assume the smallest (v7x) if query fails
    if cap >= 128 * 1024 * 1024:  # v5e / v6e: plenty of physical VMEM
        return 16 * 1024 * 1024, 48 * 1024 * 1024
    return 8 * 1024 * 1024, 32 * 1024 * 1024  # v7x-safe defaults


def _choose_tiles(R, L, dtype, per_buffer_budget):
    itemsize = jnp.dtype(dtype).itemsize
    # Sublane multiple: 8 for 32-bit, 16 for 16-bit, 32 for 8-bit dtypes.
    sub = {4: 8, 2: 16, 1: 32}.get(itemsize, 8)
    TR = min(_round_up(R, sub), 256)
    # Ensure >= 2 row blocks whenever R allows so both v7x TensorCores get
    # work along the "parallel" axis (v5e/v6e single-TC unaffected).
    if _cdiv(R, TR) < 2 and R > sub:
        TR = _round_up(_cdiv(R, 2), sub)
    # Large lane tile (multiple of 128) to amortize the ~0.35 us per-grid-step
    # overhead; keep one (TR, TL) input block <= per_buffer_budget so the
    # double-buffered pipeline (2 input bufs + scratch + output) fits the
    # scoped-VMEM limit on every generation (incl. v7x's 64 MiB physical).
    cap_lanes = max(128, (per_buffer_budget // (TR * itemsize)) // 128 * 128)
    TL = min(_round_up(L, 128), cap_lanes)
    return TR, TL


def _make_kernel(min_val, TL, rem, num_k):
    """rem = valid lanes in the LAST L block (1..TL); all static at trace time."""
    num_groups = TL // 128
    last_groups = _cdiv(rem, 128)      # 128-lane groups touched by the last block
    last_partial = rem % 128           # valid lanes in its final group (0 => full)

    def fold(x_ref, acc, masked):
        # Slice each 128-lane group straight from the ref (free aligned views),
        # fold with cheap VPU maxima — no whole-tile materialization.
        m = acc
        n = last_groups if masked else num_groups
        for g in range(n):
            blk = x_ref[:, g * 128:(g + 1) * 128]
            if masked and last_partial and g == n - 1:
                lane = jax.lax.broadcasted_iota(jnp.int32, blk.shape, 1)
                blk = jnp.where(lane < last_partial, blk,
                                jnp.full_like(blk, min_val))
            m = jnp.maximum(m, blk)
        return m

    def kernel(x_ref, o_ref, acc_ref):
        k = pl.program_id(1)

        @pl.when(k == 0)
        def _init():
            # MUST be the dtype minimum (not zero), or negative-only inputs
            # would wrongly return 0.
            acc_ref[...] = jnp.full(acc_ref.shape, min_val, acc_ref.dtype)

        if rem == TL:
            # Every L block is full: single unmasked path.
            acc_ref[...] = fold(x_ref, acc_ref[...], masked=False)
        elif num_k == 1:
            # Only one (ragged) L block.
            acc_ref[...] = fold(x_ref, acc_ref[...], masked=True)
        else:
            @pl.when(k < num_k - 1)
            def _full_blocks():
                acc_ref[...] = fold(x_ref, acc_ref[...], masked=False)

            @pl.when(k == num_k - 1)
            def _ragged_block():
                acc_ref[...] = fold(x_ref, acc_ref[...], masked=True)

        @pl.when(k == num_k - 1)
        def _finalize():
            # Single cross-lane (XLU) reduce + one (TR,1) store per row block.
            o_ref[...] = jnp.max(acc_ref[...], axis=-1, keepdims=True).astype(
                o_ref.dtype
            )

    return kernel


def global_max_pooling(x, dim=-1, *, tile_override=None):
    """Pallas equivalent of GlobalMaxPooling: x.max(dim=dim)[0]."""
    x = jnp.moveaxis(x, dim, -1)
    *lead, L = x.shape
    R = math.prod(lead) if lead else 1
    out_shape = tuple(lead)

    min_val = _min_value(x.dtype)
    per_buffer_budget, vmem_limit = _vmem_budget()
    if tile_override is None:
        TR, TL = _choose_tiles(R, L, x.dtype, per_buffer_budget)
    else:
        TR, TL = tile_override  # testing hook

    num_r = _cdiv(R, TR)
    num_k = _cdiv(L, TL)
    rem = L - (num_k - 1) * TL  # valid lanes in the last L block (static)

    xf = x.reshape(R, L)  # no padding: ragged tails handled in-kernel / by out shape
    kernel = _make_kernel(min_val, TL, rem, num_k)

    out = pl.pallas_call(
        kernel,
        out_shape=jax.ShapeDtypeStruct((R, 1), x.dtype),
        grid_spec=pltpu.PrefetchScalarGridSpec(
            num_scalar_prefetch=0,
            grid=(num_r, num_k),
            in_specs=[pl.BlockSpec((TR, TL), lambda i, k: (i, k))],
            out_specs=pl.BlockSpec((TR, 1), lambda i, k: (i, 0)),
            scratch_shapes=[pltpu.VMEM((TR, 128), x.dtype)],
        ),
        compiler_params=pltpu.CompilerParams(
            dimension_semantics=("parallel", "arbitrary"),
            vmem_limit_bytes=vmem_limit,
        ),
    )(xf)

    return out[:, 0].reshape(out_shape)


if __name__ == "__main__":
    key = jax.random.PRNGKey(0)
    # Small shape consistent with an intent-classifier conv output: (B, C, L)
    B, C, L = 2, 4, 16
    x = jax.random.normal(key, (B, C, L), dtype=jnp.float32)
    out = jax.block_until_ready(global_max_pooling(x))
    assert out.shape == (B, C)
    assert jnp.allclose(out, jnp.max(x, axis=-1)), "mismatch vs reference"

    # Unaligned shape + all-negative values: exercises the in-kernel lane mask,
    # the -inf accumulator init, and the >=2 row-block split (no wrapper pad).
    y = -jnp.abs(jax.random.normal(jax.random.PRNGKey(1), (3, 5, 200),
                                   dtype=jnp.float32)) - 1.0
    out2 = jax.block_until_ready(global_max_pooling(y))
    assert out2.shape == (3, 5)
    assert jnp.allclose(out2, jnp.max(y, axis=-1)), "mismatch vs reference (neg)"

    # Force a multi-step L grid with a ragged last block (rem=44) to exercise
    # the two-path masked/unmasked fold and multi-row-block accumulation.
    z = jax.random.normal(jax.random.PRNGKey(2), (4, 7, 300), dtype=jnp.float32)
    out3 = jax.block_until_ready(global_max_pooling(z, tile_override=(8, 128)))
    assert out3.shape == (4, 7)
    assert jnp.allclose(out3, jnp.max(z, axis=-1)), "mismatch vs reference (tiled)"

    print("KERNEL_OK")
</pallas_src>

<mosaic_0001>
module attributes {stable_mosaic.version = 11 : i64} {
  func.func @kernel(%arg0: i32, %arg1: i32, %arg2: memref<8x128xf32, #tpu.memory_space<vmem>>, %arg3: memref<8x1xf32, #tpu.memory_space<vmem>>, %arg4: memref<8x128xf32, #tpu.memory_space<vmem>>) attributes {dimension_semantics = [#tpu.dimension_semantics<parallel>, #tpu.dimension_semantics<arbitrary>], iteration_bounds = array<i64: 1, 1>, scalar_prefetch = 0 : i64, scratch_operands = 1 : i64, tpu.core_type = #tpu.core_type<tc>, window_params = [{transform_indices = @transform_0, window_bounds = array<i64: 8, 128>}, {transform_indices = @transform_1, window_bounds = array<i64: 8, 1>}]} {
    %c0_i32 = arith.constant 0 : i32
    %0 = arith.cmpi eq, %arg1, %c0_i32 : i32
    %1 = arith.extui %0 : i1 to i32
    %c0_i32_0 = arith.constant 0 : i32
    %2 = arith.cmpi ne, %1, %c0_i32_0 : i32
    scf.if %2 {
      %cst_8 = arith.constant 0xFF800000 : f32
      %15 = vector.broadcast %cst_8 : f32 to vector<8x128xf32>
      %c0_9 = arith.constant 0 : index
      %c0_10 = arith.constant 0 : index
      %16 = vector.load %arg4[%c0_9, %c0_10] : memref<8x128xf32, #tpu.memory_space<vmem>>, vector<8x128xf32>
      tpu.vector_store %arg4[%c0_9, %c0_10], %15 {strides = array<i32>} : memref<8x128xf32, #tpu.memory_space<vmem>>, vector<8x128xf32>,
    } else {
    }
    %c0 = arith.constant 0 : index
    %c0_1 = arith.constant 0 : index
    %3 = vector.load %arg4[%c0, %c0_1] : memref<8x128xf32, #tpu.memory_space<vmem>>, vector<8x128xf32>
    %c0_2 = arith.constant 0 : index
    %c0_3 = arith.constant 0 : index
    %4 = vector.load %arg2[%c0_2, %c0_3] : memref<8x128xf32, #tpu.memory_space<vmem>>, vector<8x128xf32>
    %5 = tpu.iota {dimensions = array<i32: 1>} : vector<8x128xi32>
    %c16_i32 = arith.constant 16 : i32
    %6 = vector.broadcast %c16_i32 : i32 to vector<8x128xi32>
    %7 = arith.cmpi slt, %5, %6 : vector<8x128xi32>
    %cst = arith.constant 0xFF800000 : f32
    %8 = vector.broadcast %cst : f32 to vector<8x128xf32>
    %9 = arith.select %7, %4, %8 : vector<8x128xi1>, vector<8x128xf32>
    %10 = arith.maximumf %3, %9 : vector<8x128xf32>
    %c0_4 = arith.constant 0 : index
    %c0_5 = arith.constant 0 : index
    %11 = vector.load %arg4[%c0_4, %c0_5] : memref<8x128xf32, #tpu.memory_space<vmem>>, vector<8x128xf32>
    tpu.vector_store %arg4[%c0_4, %c0_5], %10 {strides = array<i32>} : memref<8x128xf32, #tpu.memory_space<vmem>>, vector<8x128xf32>,
    %c0_i32_6 = arith.constant 0 : i32
    %12 = arith.cmpi eq, %arg1, %c0_i32_6 : i32
    %13 = arith.extui %12 : i1 to i32
    %c0_i32_7 = arith.constant 0 : i32
    %14 = arith.cmpi ne, %13, %c0_i32_7 : i32
    scf.if %14 {
      %c0_8 = arith.constant 0 : index
      %c0_9 = arith.constant 0 : index
      %15 = vector.load %arg4[%c0_8, %c0_9] : memref<8x128xf32, #tpu.memory_space<vmem>>, vector<8x128xf32>
      %cst_10 = arith.constant dense<0xFF800000> : vector<8xf32>
      %16 = vector.multi_reduction <maximumf>, %15, %cst_10 [1] : vector<8x128xf32> to vector<8xf32>
      %17 = vector.shape_cast %16 : vector<8xf32> to vector<8x1xf32>
      %c0_11 = arith.constant 0 : index
      %c0_12 = arith.constant 0 : index
      %18 = vector.load %arg3[%c0_11, %c0_12] : memref<8x1xf32, #tpu.memory_space<vmem>>, vector<8x1xf32>
      tpu.vector_store %arg3[%c0_11, %c0_12], %17 {strides = array<i32>} : memref<8x1xf32, #tpu.memory_space<vmem>>, vector<8x1xf32>,
    } else {
    }
    return
  }
  func.func @transform_0(%arg0: i32, %arg1: i32) -> (i32, i32) {
    %c0_i32 = arith.constant 0 : i32
    return %arg0, %arg1 : i32, i32
  }
  func.func @transform_1(%arg0: i32, %arg1: i32) -> (i32, i32) {
    %c0_i32 = arith.constant 0 : i32
    %c0_i32_0 = arith.constant 0 : i32
    return %arg0, %c0_i32 : i32, i32
  }
}

</mosaic_0001>

<bundles_post_ra>
// kernel: tpu_custom_call.1
= control target key start
LH: loop header
LB: loop body
LE: loop exit
PB: predicated region body
PF: predicated region fallthrough
CT: control target
= control target key end

     0   :  { %6 = vsyncpa [#allocation4], 0  ;;  %s71_s6 = smov [#allocation3]   ;;  %s97_s0 = inlined_call_operand.hbm [shape: f32[8,16], index: 0, kind: input, shape index: {}]   ;;  %s98_s1 = inlined_call_operand.vmem [shape: f32[8,1], index: 1, kind: output, shape index: {}]  }
   0x1   :  { %s13_s7 = sshll.u32 %s71_s6, 4  ;;  %s47_s10 = scalar_lea.hbm %s97_s0, 128  ;;  %s14_s7 = int_to_ptr.vmem [resolvable:$true] %s13_s7 }
   0x2   :  { %p48_p0 = scmp.ne.s32.totalorder %s97_s0, %s47_s10  ;;  %p51_p1 = scmp.lt.u32.totalorder %s47_s10, %s97_s0 }
   0x4   :  { %p53_p2 = pnand %p51_p1, %p48_p0 }
   0x6   :  { %56 = shalt.err (!%p53_p2)
}
   0x7   :  { %s57_s15 = scalar_lea.vmem %s14_s7, 128  ;;  %p62_p4 = scmp.lt.s32.totalorder %s14_s7, %s14_s7 }
   0x8   :  { %p58_p3 = scmp.ne.s32.totalorder %s14_s7, %s57_s15  ;;  %p63_p5 = scmp.lt.s32.totalorder %s57_s15, %s57_s15 }
   0xa   :  { %p64_p6 = por %p63_p5, %p62_p4 }
   0xc   :  { %p65_p7 = pnand %p64_p6, %p58_p3 }
   0xe   :  { %68 = shalt.err (!%p65_p7)
}
   0xf   :  { %16 = dma.hbm_to_vmem [thread:$0]  %s97_s0, 128, %s14_s7, [#allocation4]  }
  0x10   :  { %69 = dma.done.wait [#allocation4], 128  }
  0x11   :  { %70 = vsyncadd [#allocation4], 4294967168  ;;  %v27_v0 = vlaneseq  ;;  %v26_v2 = vld [vmem:[#allocation3] sm:$0xff]  ;;  %vm39_vm1 = vcmask 7168  }
  0x13   :  { %v28_v1 = vand.u32 127, %v27_v0 }
  0x15   :  { %vm29_vm0 = vcmp.lt.s32.totalorder %v28_v1, 16 }
  0x16   :  { %v30_v3 = vsel %vm29_vm0, %v26_v2, -inf }
  0x17   :  { %37 = vmax.xlane.f32.xlu0 %v30_v3 }
  0xa4   :  { %v38_v4 = vpop.xlane.xlu0 %37 }
  0xa5   :  { %40 = vst.msk [vmem:[%s98_s1] sm:$0xff] %vm39_vm1, %v38_v4 }
  0xa6   :  { %45 = vsyncpa [#allocation4], 1 }

</bundles_post_ra>
